<compile_context>
chip_gen: v6e
topology: v6e:2x2x1
jax: 0.10.0
libtpu: 0.0.40
codegen_flags: <defaults>
</compile_context>

<pallas_src>
import functools
import math

import jax
import jax.numpy as jnp
import numpy as np
from jax import lax
from jax.experimental import pallas as pl
from jax.experimental.pallas import tpu as pltpu

BN_EPS = 1e-5
GN_EPS = 1e-5
PRELU_ALPHA = 0.25  # nn.PReLU() default init (single scalar)


def _round_up(x, m):
    return (x + m - 1) // m * m


def _pick_tr(ho, wo, row_cap=1024):
    """Largest divisor of ho with tr*wo <= row_cap rows per MXU tile."""
    best = 1
    for tr in range(1, ho + 1):
        if ho % tr == 0 and tr * wo <= row_cap:
            best = tr
    return best


# -----------------------------------------------------------------------------
# Fused conv kernel: per grid step, k*k accumulating MXU dots over shifted
# windows of the VMEM-resident padded activation, then BN-shift + activation
# (+ fused residual) epilogue.  No HBM im2col is ever materialized.
# -----------------------------------------------------------------------------
def _make_conv_kernel(k, cin, tr, wo, act, alpha, has_res):
    def kernel(x_ref, w_ref, s_ref, *rest):
        if has_res:
            res_ref, o_ref = rest
        else:
            (o_ref,) = rest
        i = pl.program_id(1)
        row0 = i * tr
        # One dynamic-row slab load; every tap window is a static slice of it.
        slab = x_ref[:, pl.ds(row0, tr + k - 1), :, :]   # (1, tr+k-1, Wp, cin)
        acc = None
        for dy in range(k):
            for dx in range(k):
                xt = slab[:, dy:dy + tr, dx:dx + wo, :]
                xm = xt.reshape(tr * wo, cin)
                t = dy * k + dx
                wt = w_ref[t * cin:(t + 1) * cin, :]
                part = jnp.dot(xm, wt, preferred_element_type=jnp.float32)
                acc = part if acc is None else acc + part
        y = acc + s_ref[...]          # BN shift (scale already folded into w)
        if act == "prelu":
            y = jnp.where(y >= 0.0, y, alpha * y)
        elif act == "sigmoid":
            y = jax.nn.sigmoid(y)
        elif act == "tanh":
            y = jnp.tanh(y)
        if has_res:
            y = y + res_ref[...].reshape(tr * wo, -1).astype(jnp.float32)
        o_ref[...] = y.reshape(o_ref.shape).astype(o_ref.dtype)
    return kernel


def conv2d_fused(x, pack, *, k, pad=0, pad_mode="constant", act="none",
                 residual=None, out_dtype=jnp.bfloat16, alpha=PRELU_ALPHA):
    """out = act(conv_k(x) * BNscale + BNshift) [+ residual], as one launch."""
    B, H, W, Cin = x.shape
    assert Cin == pack["cin"] and k == pack["ksize"]
    xb = x if x.dtype == jnp.bfloat16 else x.astype(jnp.bfloat16)
    if pad > 0:
        xb = jnp.pad(xb, ((0, 0), (pad, pad), (pad, pad), (0, 0)), mode=pad_mode)
    Hp, Wp = H + 2 * pad, W + 2 * pad
    HO, WO = Hp - k + 1, Wp - k + 1
    K = k * k * Cin

    wp, sh = pack["w"], pack["b"]
    Np, N = wp.shape[1], pack["n"]
    if Np <= 256:
        tn = Np
    elif Np % 256 == 0:
        tn = 256                       # keep v6e/v7x's 256-wide MXU full
    else:
        tn = 128
    TR = _pick_tr(HO, WO)

    if residual is not None and Np != N:
        residual = jnp.pad(residual, ((0, 0), (0, 0), (0, 0), (0, Np - N)))

    kern = _make_conv_kernel(k, Cin, TR, WO, act, alpha, residual is not None)
    in_specs = [
        pl.BlockSpec((1, Hp, Wp, Cin), lambda b, i, j: (b, 0, 0, 0)),  # activation
        pl.BlockSpec((K, tn), lambda b, i, j: (0, j)),                 # weight
        pl.BlockSpec((1, tn), lambda b, i, j: (0, j)),                 # BN shift
    ]
    args = [xb, wp, sh]
    if residual is not None:
        in_specs.append(pl.BlockSpec((1, TR, WO, tn), lambda b, i, j: (b, i, 0, j)))
        args.append(residual)

    out = pl.pallas_call(
        kern,
        out_shape=jax.ShapeDtypeStruct((B, HO, WO, Np), out_dtype),
        grid_spec=pltpu.PrefetchScalarGridSpec(
            num_scalar_prefetch=0,
            grid=(B, HO // TR, Np // tn),
            in_specs=in_specs,
            out_specs=pl.BlockSpec((1, TR, WO, tn), lambda b, i, j: (b, i, 0, j)),
        ),
        compiler_params=pltpu.CompilerParams(
            dimension_semantics=("parallel", "parallel", "parallel")),
    )(*args)
    if Np != N:
        out = out[..., :N]
    return out


def conv_transpose_fused(x, pack):
    """ConvTranspose2d(k=4, s=2, p=1) via 4-phase decomposition: one fused 3x3
    Pallas conv producing all four output parities, then a bf16 interleave."""
    B, H, W, _ = x.shape
    Cout = pack["cout"]
    y = conv2d_fused(x, pack, k=3, pad=1, pad_mode="constant", act="none",
                     out_dtype=jnp.bfloat16)                   # (B,H,W,4*Cout)
    y = y.reshape(B, H, W, 2, 2, Cout)
    y = jnp.transpose(y, (0, 1, 3, 2, 4, 5)).reshape(B, 2 * H, 2 * W, Cout)
    return y


# -----------------------------------------------------------------------------
# Glue ops (plain XLA): degenerate micro-convs, pooling, matrix bilinear
# resize, GroupNorm+PReLU.
# -----------------------------------------------------------------------------
def small_conv_bn_sigmoid(fea, w_hwio, scale, shift):
    # ReflectionPad2d(1) + Conv2d(width -> 1, k=3) + BN(1) + Sigmoid (Cout=1:
    # a >99%-padded MXU launch would be wasted; keep it on the VPU via XLA).
    xf = fea.astype(jnp.float32)
    xp = jnp.pad(xf, ((0, 0), (1, 1), (1, 1), (0, 0)), mode="reflect")
    y = lax.conv_general_dilated(
        xp, w_hwio, window_strides=(1, 1), padding="VALID",
        dimension_numbers=("NHWC", "HWIO", "NHWC"))
    return jax.nn.sigmoid(y * scale + shift)


def final_conv_tanh(x, w_hwio, bias):
    # ReflectionPad2d(3) + Conv2d(ngf -> output_nc, k=7, bias=True) + Tanh
    xp = jnp.pad(x, ((0, 0), (3, 3), (3, 3), (0, 0)), mode="reflect")
    y = lax.conv_general_dilated(
        xp, w_hwio, window_strides=(1, 1), padding="VALID",
        dimension_numbers=("NHWC", "HWIO", "NHWC"))
    return jnp.tanh(y + bias)


def avg_pool(x, k, s):
    xf = x.astype(jnp.float32)
    out = lax.reduce_window(xf, 0.0, lax.add, (1, k, k, 1), (1, s, s, 1), "VALID")
    return out / float(k * k)


@functools.lru_cache(maxsize=None)
def _bilinear_matrix(in_size, out_size):
    # Matches F.interpolate(mode='bilinear', align_corners=False).
    m = np.zeros((out_size, in_size), np.float32)
    scale = in_size / out_size
    for o in range(out_size):
        src = max((o + 0.5) * scale - 0.5, 0.0)
        i0 = min(int(math.floor(src)), in_size - 1)
        i1 = min(i0 + 1, in_size - 1)
        t = src - i0
        m[o, i0] += 1.0 - t
        m[o, i1] += t
    return m


def resize_bilinear(x, out_h, out_w):
    # Dense contraction form (no gathers); coefficient matrices are host-built
    # compile-time constants.
    _, H, W, _ = x.shape
    wh = jnp.asarray(_bilinear_matrix(H, out_h))
    ww = jnp.asarray(_bilinear_matrix(W, out_w))
    y = jnp.einsum("oh,bhwc->bowc", wh, x.astype(jnp.float32))
    return jnp.einsum("pw,bowc->bopc", ww, y)


def group_norm_prelu(x, num_groups, gamma, beta, out_dtype,
                     eps=GN_EPS, alpha=PRELU_ALPHA):
    B, H, W, C = x.shape
    xf = x.astype(jnp.float32).reshape(B, H, W, num_groups, C // num_groups)
    mean = xf.mean(axis=(1, 2, 4), keepdims=True)
    var = ((xf - mean) ** 2).mean(axis=(1, 2, 4), keepdims=True)
    xn = ((xf - mean) * lax.rsqrt(var + eps)).reshape(B, H, W, C)
    y = xn * gamma + beta
    y = jnp.where(y >= 0.0, y, alpha * y)
    return y.astype(out_dtype)


# -----------------------------------------------------------------------------
# Module forward passes
# -----------------------------------------------------------------------------
def pga_res_block(p, x):
    # PGAResBlockv4k3.forward ; x: (B, H, W, C) NHWC float32
    B, H, W, C = x.shape
    width = C // 4

    input_fea = conv2d_fused(x, p["conv1x1"], k=1, act="prelu",
                             out_dtype=jnp.bfloat16)
    spx = [input_fea[..., i * width:(i + 1) * width] for i in range(4)]
    fea_ds1 = avg_pool(spx[0], 3, 2)
    fea_ds2 = avg_pool(spx[1], 3, 4)
    fea_ds3 = avg_pool(spx[2], 3, 8)
    fea_ds4 = avg_pool(spx[3], 3, 16)

    def bott(bp, fea):
        return small_conv_bn_sigmoid(fea, bp["w_hwio"], bp["s"], bp["b"])

    att_conv1 = bott(p["bott"][0], fea_ds4)
    att_map1_us = resize_bilinear(att_conv1, H, W)
    att_map_g1 = resize_bilinear(att_conv1, fea_ds3.shape[1], fea_ds3.shape[2])
    fea_att1 = att_map_g1 * fea_ds3 + fea_ds3

    att_conv2 = bott(p["bott"][1], fea_att1)
    att_map2_us = resize_bilinear(att_conv2, H, W)
    att_map_g2 = resize_bilinear(att_conv2, fea_ds2.shape[1], fea_ds2.shape[2])
    fea_att2 = att_map_g2 * fea_ds2 + fea_ds2

    att_conv3 = bott(p["bott"][2], fea_att2)
    att_map3_us = resize_bilinear(att_conv3, H, W)
    att_map_g3 = resize_bilinear(att_conv3, fea_ds1.shape[1], fea_ds1.shape[2])
    fea_att3 = att_map_g3 * fea_ds1 + fea_ds1

    att_conv4 = bott(p["bott"][3], fea_att3)
    att_map4_us = resize_bilinear(att_conv4, H, W)

    y1 = att_map4_us * spx[0].astype(jnp.float32)
    y2 = att_map3_us * spx[1].astype(jnp.float32)
    y3 = att_map2_us * spx[2].astype(jnp.float32)
    y4 = att_map1_us * spx[3].astype(jnp.float32)
    out = (jnp.concatenate([y1, y2, y3, y4], axis=-1) + x).astype(jnp.bfloat16)
    return out, att_map1_us, att_map2_us, att_map3_us, att_map4_us


def resnet_block(bp, x):
    # conv1: BN+PReLU fused; conv2: BN + residual add fused in the epilogue.
    h = conv2d_fused(x, bp["c1"], k=3, pad=1, pad_mode="reflect",
                     act="prelu", out_dtype=jnp.bfloat16)
    return conv2d_fused(h, bp["c2"], k=3, pad=1, pad_mode="reflect",
                        act="none", residual=x, out_dtype=jnp.bfloat16)


def resnet_gen_decoder_forward(p, x_nchw):
    x = jnp.transpose(x_nchw, (0, 2, 3, 1)).astype(jnp.float32)  # NCHW -> NHWC

    out1, _, _, _, _ = pga_res_block(p["att"], x)

    h = out1
    for bp in p["blocks"]:
        h = resnet_block(bp, h)

    # upsampling 1: ConvTranspose2d(4*ngf -> 2*ngf, 4, s=2, p=1) + GN(32) + PReLU
    h = conv_transpose_fused(h, p["ct1"])
    h = group_norm_prelu(h, 32, p["gn1_g"], p["gn1_b"], out_dtype=jnp.bfloat16)
    # upsampling 2: ConvTranspose2d(2*ngf -> ngf, 4, s=2, p=1) + GN(32) + PReLU
    h = conv_transpose_fused(h, p["ct2"])
    h = group_norm_prelu(h, 32, p["gn2_g"], p["gn2_b"], out_dtype=jnp.float32)
    # ReflectionPad2d(3) + Conv2d(ngf -> output_nc, k=7, bias) + Tanh
    h = final_conv_tanh(h, p["final_w_hwio"], p["final_b"])

    return jnp.transpose(h, (0, 3, 1, 2))  # NHWC -> NCHW


# -----------------------------------------------------------------------------
# One-time parameter preparation (hoisted out of the forward pass)
# -----------------------------------------------------------------------------
def _bn_fold(bn):
    scale = bn["g"] * lax.rsqrt(bn["rv"] + BN_EPS)
    shift = bn["b"] - bn["rm"] * scale
    return scale, shift


def _pack_mat(w_mat, shift, cin, ksize):
    K, N = w_mat.shape
    Np = _round_up(N, 128)
    wp = jnp.pad(w_mat.astype(jnp.float32), ((0, 0), (0, Np - N)))
    sh = jnp.pad(shift.astype(jnp.float32), (0, Np - N)).reshape(1, Np)
    return {"w": wp.astype(jnp.bfloat16), "b": sh,
            "n": int(N), "cin": int(cin), "ksize": int(ksize)}


def _pack_conv(w_oihw, scale, shift):
    Cout, Cin, kh, kw = w_oihw.shape
    w_mat = jnp.transpose(w_oihw, (2, 3, 1, 0)).reshape(kh * kw * Cin, Cout)
    w_mat = w_mat * scale[None, :]          # fold BN scale into weight columns
    return _pack_mat(w_mat, shift, Cin, kh)


def _pack_conv_transpose(w_iohw):
    # ConvTranspose2d(k=4, s=2, p=1) == four 2x2 stride-1 convs on the
    # zero-padded (pad=1) input, one per output parity; all four phases folded
    # into ONE (9*Cin, 4*Cout) matmul over 3x3 windows.
    Cin, Cout, k, _ = w_iohw.shape
    assert k == 4
    w_eq = jnp.transpose(jnp.flip(w_iohw, axis=(2, 3)), (1, 0, 2, 3))  # (Cout,Cin,4,4)
    wc = jnp.zeros((3, 3, Cin, 4 * Cout), jnp.float32)
    for py in range(2):
        for px in range(2):
            ph = py * 2 + px
            for ry in range(2):
                for rx in range(2):
                    tap = jnp.transpose(w_eq[:, :, py + 2 * ry, px + 2 * rx])  # (Cin,Cout)
                    wc = wc.at[py + ry, px + rx, :, ph * Cout:(ph + 1) * Cout].set(tap)
    pack = _pack_mat(wc.reshape(9 * Cin, 4 * Cout),
                     jnp.zeros((4 * Cout,), jnp.float32), Cin, 3)
    pack["cout"] = int(Cout)
    return pack


def prepare_params(raw):
    a = raw["att"]
    s, b = _bn_fold(a["bn"])
    att = {"conv1x1": _pack_conv(a["conv_w"], s, b), "bott": []}
    for bo in a["bott"]:
        s1, b1 = _bn_fold(bo["bn"])
        att["bott"].append({"w_hwio": jnp.transpose(bo["w"], (2, 3, 1, 0)),
                            "s": s1, "b": b1})
    blocks = []
    for blk in raw["blocks"]:
        s1, b1 = _bn_fold(blk["bn1"])
        s2, b2 = _bn_fold(blk["bn2"])
        blocks.append({"c1": _pack_conv(blk["w1"], s1, b1),
                       "c2": _pack_conv(blk["w2"], s2, b2)})
    return {
        "att": att, "blocks": blocks,
        "ct1": _pack_conv_transpose(raw["ct1_w"]),
        "gn1_g": raw["gn1_g"], "gn1_b": raw["gn1_b"],
        "ct2": _pack_conv_transpose(raw["ct2_w"]),
        "gn2_g": raw["gn2_g"], "gn2_b": raw["gn2_b"],
        "final_w_hwio": jnp.transpose(raw["final_w"], (2, 3, 1, 0)),
        "final_b": raw["final_b"],
    }


# -----------------------------------------------------------------------------
# Deterministic synthetic parameter init (raw, PyTorch-layout)
# -----------------------------------------------------------------------------
def init_raw_params(key, ngf=32, output_nc=3, n_blocks=2):
    dim = ngf * 4
    width = dim // 4
    keys = list(jax.random.split(key, 256))
    idx = [0]

    def nk():
        k = keys[idx[0]]
        idx[0] += 1
        return k

    def conv_w(cout, cin, k):
        fan_in = cin * k * k
        return jax.random.normal(nk(), (cout, cin, k, k),
                                 jnp.float32) / math.sqrt(fan_in)

    def vec(n, base, std=0.1):
        return base + std * jax.random.normal(nk(), (n,), jnp.float32)

    def bn(n):
        return {"g": vec(n, 1.0), "b": vec(n, 0.0),
                "rm": jnp.zeros((n,), jnp.float32),
                "rv": jnp.ones((n,), jnp.float32)}

    att = {"conv_w": conv_w(dim, dim, 1), "bn": bn(dim),
           "bott": [{"w": conv_w(1, width, 3), "bn": bn(1)} for _ in range(4)]}
    blocks = [{"w1": conv_w(dim, dim, 3), "bn1": bn(dim),
               "w2": conv_w(dim, dim, 3), "bn2": bn(dim)}
              for _ in range(n_blocks)]
    ct1_w = jax.random.normal(nk(), (dim, dim // 2, 4, 4),
                              jnp.float32) / math.sqrt(dim * 16)
    ct2_w = jax.random.normal(nk(), (dim // 2, ngf, 4, 4),
                              jnp.float32) / math.sqrt((dim // 2) * 16)
    return {
        "att": att, "blocks": blocks,
        "ct1_w": ct1_w, "gn1_g": vec(dim // 2, 1.0), "gn1_b": vec(dim // 2, 0.0),
        "ct2_w": ct2_w, "gn2_g": vec(ngf, 1.0), "gn2_b": vec(ngf, 0.0),
        "final_w": conv_w(output_nc, ngf, 7),
        "final_b": vec(output_nc, 0.0),
    }


# -----------------------------------------------------------------------------
# Numerical self-checks (conv-transpose phase packing + in-kernel windowing)
# -----------------------------------------------------------------------------
def _assert_close(got, ref, name, rel=2e-2):
    got = jnp.asarray(got, jnp.float32)
    ref = jnp.asarray(ref, jnp.float32)
    err = float(jnp.max(jnp.abs(got - ref)))
    scale = float(jnp.max(jnp.abs(ref))) + 1e-6
    assert err <= rel * scale, f"{name}: max err {err:.4e} vs scale {scale:.4e}"


def _conv_transpose_reference(x_nhwc, w_iohw):
    # PyTorch ConvTranspose2d(k=4, s=2, p=1, bias=False) via lhs-dilated conv.
    w_hwio = jnp.transpose(jnp.flip(w_iohw, axis=(2, 3)), (2, 3, 0, 1))
    return lax.conv_general_dilated(
        x_nhwc, w_hwio, window_strides=(1, 1),
        padding=((2, 2), (2, 2)), lhs_dilation=(2, 2),
        dimension_numbers=("NHWC", "HWIO", "NHWC"),
        precision=lax.Precision.HIGHEST)


def _self_check(raw, params, key):
    k1, k2 = jax.random.split(key)
    # (a) ConvTranspose2d 4-phase packing + parity interleave.
    cin = raw["ct2_w"].shape[0]
    xt = jax.random.normal(k1, (2, 8, 8, cin), jnp.float32).astype(jnp.bfloat16)
    got = conv_transpose_fused(xt, params["ct2"])
    w_r = raw["ct2_w"].astype(jnp.bfloat16).astype(jnp.float32)
    ref = _conv_transpose_reference(xt.astype(jnp.float32), w_r)
    _assert_close(got, ref, "conv_transpose_4phase")
    # (b) 3x3 reflect-pad conv via in-kernel shifted windows (BN scale folded).
    dim = raw["blocks"][0]["w1"].shape[0]
    xc = jax.random.normal(k2, (2, 8, 8, dim), jnp.float32).astype(jnp.bfloat16)
    got = conv2d_fused(xc, params["blocks"][0]["c1"], k=3, pad=1,
                       pad_mode="reflect", act="none", out_dtype=jnp.float32)
    s1, b1 = _bn_fold(raw["blocks"][0]["bn1"])
    wf = (raw["blocks"][0]["w1"] * s1[:, None, None, None]
          ).astype(jnp.bfloat16).astype(jnp.float32)
    xp = jnp.pad(xc.astype(jnp.float32), ((0, 0), (1, 1), (1, 1), (0, 0)),
                 mode="reflect")
    ref = lax.conv_general_dilated(
        xp, jnp.transpose(wf, (2, 3, 1, 0)), (1, 1), "VALID",
        dimension_numbers=("NHWC", "HWIO", "NHWC"),
        precision=lax.Precision.HIGHEST) + b1
    _assert_close(got, ref, "conv3x3_reflect")


if __name__ == "__main__":
    # ngf=32 keeps GroupNorm(32, ·) divisibility; spatial 24 keeps the stride-16
    # AvgPool output >= 2 so ReflectionPad2d(1) is valid (as in PyTorch).
    ngf, output_nc, n_blocks = 32, 3, 2
    B, H, W = 2, 24, 24
    C = ngf * 4  # 128 channels at the decoder bottleneck

    key = jax.random.PRNGKey(0)
    pkey, xkey, ckey = jax.random.split(key, 3)
    raw = init_raw_params(pkey, ngf=ngf, output_nc=output_nc, n_blocks=n_blocks)
    params = prepare_params(raw)          # one-time weight prep (hoisted)
    x = jax.random.normal(xkey, (B, C, H, W), jnp.float32)

    _self_check(raw, params, ckey)        # guards the packing / window math

    fwd = jax.jit(functools.partial(resnet_gen_decoder_forward, params))
    out = fwd(x)
    jax.block_until_ready(out)
    assert out.shape == (B, output_nc, 4 * H, 4 * W), out.shape
    assert bool(jnp.all(jnp.isfinite(out)))
    print("KERNEL_OK")
</pallas_src>

<mosaic_0001>
module attributes {stable_mosaic.version = 11 : i64} {
  func.func @kernel(%arg0: i32, %arg1: i32, %arg2: i32, %arg3: memref<1x10x10x64xbf16, #tpu.memory_space<vmem>>, %arg4: memref<576x128xbf16, #tpu.memory_space<vmem>>, %arg5: memref<1x128xf32, #tpu.memory_space<vmem>>, %arg6: memref<1x8x8x128xbf16, #tpu.memory_space<vmem>>) attributes {dimension_semantics = [#tpu.dimension_semantics<parallel>, #tpu.dimension_semantics<parallel>, #tpu.dimension_semantics<parallel>], iteration_bounds = array<i64: 2, 1, 1>, scalar_prefetch = 0 : i64, scratch_operands = 0 : i64, tpu.core_type = #tpu.core_type<tc>, window_params = [{transform_indices = @transform_0, window_bounds = array<i64: 1, 10, 10, 64>}, {transform_indices = @transform_1, window_bounds = array<i64: 576, 128>}, {transform_indices = @transform_2, window_bounds = array<i64: 1, 128>}, {transform_indices = @transform_3, window_bounds = array<i64: 1, 8, 8, 128>}]} {
    %c8_i32 = arith.constant 8 : i32
    %0 = arith.muli %arg1, %c8_i32 : i32
    %c0 = arith.constant 0 : index
    %1 = arith.index_cast %0 : i32 to index
    %c0_0 = arith.constant 0 : index
    %c0_1 = arith.constant 0 : index
    %2 = vector.load %arg3[%c0, %1, %c0_0, %c0_1] : memref<1x10x10x64xbf16, #tpu.memory_space<vmem>>, vector<1x10x10x64xbf16>
    %3 = vector.extract_strided_slice %2 {offsets = [0, 0, 0, 0], sizes = [1, 8, 8, 64], strides = [1, 1, 1, 1]} : vector<1x10x10x64xbf16> to vector<1x8x8x64xbf16>
    %4 = vector.shape_cast %3 : vector<1x8x8x64xbf16> to vector<64x64xbf16>
    %c0_2 = arith.constant 0 : index
    %c0_3 = arith.constant 0 : index
    %5 = vector.load %arg4[%c0_2, %c0_3] : memref<576x128xbf16, #tpu.memory_space<vmem>>, vector<64x128xbf16>
    %cst = arith.constant dense<0.000000e+00> : vector<64x128xf32>
    %6 = tpu.matmul %4, %5, %cst {dimension_numbers = #tpu.dot_dimension_numbers<[1], [0], [0], [1], [0, 0, 1, 1], [], []>} : vector<64x64xbf16>, vector<64x128xbf16>, vector<64x128xf32> -> vector<64x128xf32>
    %7 = vector.extract_strided_slice %2 {offsets = [0, 0, 1, 0], sizes = [1, 8, 8, 64], strides = [1, 1, 1, 1]} : vector<1x10x10x64xbf16> to vector<1x8x8x64xbf16>
    %8 = vector.shape_cast %7 : vector<1x8x8x64xbf16> to vector<64x64xbf16>
    %c64 = arith.constant 64 : index
    %c0_4 = arith.constant 0 : index
    %9 = vector.load %arg4[%c64, %c0_4] : memref<576x128xbf16, #tpu.memory_space<vmem>>, vector<64x128xbf16>
    %cst_5 = arith.constant dense<0.000000e+00> : vector<64x128xf32>
    %10 = tpu.matmul %8, %9, %cst_5 {dimension_numbers = #tpu.dot_dimension_numbers<[1], [0], [0], [1], [0, 0, 1, 1], [], []>} : vector<64x64xbf16>, vector<64x128xbf16>, vector<64x128xf32> -> vector<64x128xf32>
    %11 = arith.addf %6, %10 : vector<64x128xf32>
    %12 = vector.extract_strided_slice %2 {offsets = [0, 0, 2, 0], sizes = [1, 8, 8, 64], strides = [1, 1, 1, 1]} : vector<1x10x10x64xbf16> to vector<1x8x8x64xbf16>
    %13 = vector.shape_cast %12 : vector<1x8x8x64xbf16> to vector<64x64xbf16>
    %c128 = arith.constant 128 : index
    %c0_6 = arith.constant 0 : index
    %14 = vector.load %arg4[%c128, %c0_6] : memref<576x128xbf16, #tpu.memory_space<vmem>>, vector<64x128xbf16>
    %cst_7 = arith.constant dense<0.000000e+00> : vector<64x128xf32>
    %15 = tpu.matmul %13, %14, %cst_7 {dimension_numbers = #tpu.dot_dimension_numbers<[1], [0], [0], [1], [0, 0, 1, 1], [], []>} : vector<64x64xbf16>, vector<64x128xbf16>, vector<64x128xf32> -> vector<64x128xf32>
    %16 = arith.addf %11, %15 : vector<64x128xf32>
    %17 = vector.extract_strided_slice %2 {offsets = [0, 1, 0, 0], sizes = [1, 8, 8, 64], strides = [1, 1, 1, 1]} : vector<1x10x10x64xbf16> to vector<1x8x8x64xbf16>
    %18 = vector.shape_cast %17 : vector<1x8x8x64xbf16> to vector<64x64xbf16>
    %c192 = arith.constant 192 : index
    %c0_8 = arith.constant 0 : index
    %19 = vector.load %arg4[%c192, %c0_8] : memref<576x128xbf16, #tpu.memory_space<vmem>>, vector<64x128xbf16>
    %cst_9 = arith.constant dense<0.000000e+00> : vector<64x128xf32>
    %20 = tpu.matmul %18, %19, %cst_9 {dimension_numbers = #tpu.dot_dimension_numbers<[1], [0], [0], [1], [0, 0, 1, 1], [], []>} : vector<64x64xbf16>, vector<64x128xbf16>, vector<64x128xf32> -> vector<64x128xf32>
    %21 = arith.addf %16, %20 : vector<64x128xf32>
    %22 = vector.extract_strided_slice %2 {offsets = [0, 1, 1, 0], sizes = [1, 8, 8, 64], strides = [1, 1, 1, 1]} : vector<1x10x10x64xbf16> to vector<1x8x8x64xbf16>
    %23 = vector.shape_cast %22 : vector<1x8x8x64xbf16> to vector<64x64xbf16>
    %c256 = arith.constant 256 : index
    %c0_10 = arith.constant 0 : index
    %24 = vector.load %arg4[%c256, %c0_10] : memref<576x128xbf16, #tpu.memory_space<vmem>>, vector<64x128xbf16>
    %cst_11 = arith.constant dense<0.000000e+00> : vector<64x128xf32>
    %25 = tpu.matmul %23, %24, %cst_11 {dimension_numbers = #tpu.dot_dimension_numbers<[1], [0], [0], [1], [0, 0, 1, 1], [], []>} : vector<64x64xbf16>, vector<64x128xbf16>, vector<64x128xf32> -> vector<64x128xf32>
    %26 = arith.addf %21, %25 : vector<64x128xf32>
    %27 = vector.extract_strided_slice %2 {offsets = [0, 1, 2, 0], sizes = [1, 8, 8, 64], strides = [1, 1, 1, 1]} : vector<1x10x10x64xbf16> to vector<1x8x8x64xbf16>
    %28 = vector.shape_cast %27 : vector<1x8x8x64xbf16> to vector<64x64xbf16>
    %c320 = arith.constant 320 : index
    %c0_12 = arith.constant 0 : index
    %29 = vector.load %arg4[%c320, %c0_12] : memref<576x128xbf16, #tpu.memory_space<vmem>>, vector<64x128xbf16>
    %cst_13 = arith.constant dense<0.000000e+00> : vector<64x128xf32>
    %30 = tpu.matmul %28, %29, %cst_13 {dimension_numbers = #tpu.dot_dimension_numbers<[1], [0], [0], [1], [0, 0, 1, 1], [], []>} : vector<64x64xbf16>, vector<64x128xbf16>, vector<64x128xf32> -> vector<64x128xf32>
    %31 = arith.addf %26, %30 : vector<64x128xf32>
    %32 = vector.extract_strided_slice %2 {offsets = [0, 2, 0, 0], sizes = [1, 8, 8, 64], strides = [1, 1, 1, 1]} : vector<1x10x10x64xbf16> to vector<1x8x8x64xbf16>
    %33 = vector.shape_cast %32 : vector<1x8x8x64xbf16> to vector<64x64xbf16>
    %c384 = arith.constant 384 : index
    %c0_14 = arith.constant 0 : index
    %34 = vector.load %arg4[%c384, %c0_14] : memref<576x128xbf16, #tpu.memory_space<vmem>>, vector<64x128xbf16>
    %cst_15 = arith.constant dense<0.000000e+00> : vector<64x128xf32>
    %35 = tpu.matmul %33, %34, %cst_15 {dimension_numbers = #tpu.dot_dimension_numbers<[1], [0], [0], [1], [0, 0, 1, 1], [], []>} : vector<64x64xbf16>, vector<64x128xbf16>, vector<64x128xf32> -> vector<64x128xf32>
    %36 = arith.addf %31, %35 : vector<64x128xf32>
    %37 = vector.extract_strided_slice %2 {offsets = [0, 2, 1, 0], sizes = [1, 8, 8, 64], strides = [1, 1, 1, 1]} : vector<1x10x10x64xbf16> to vector<1x8x8x64xbf16>
    %38 = vector.shape_cast %37 : vector<1x8x8x64xbf16> to vector<64x64xbf16>
    %c448 = arith.constant 448 : index
    %c0_16 = arith.constant 0 : index
    %39 = vector.load %arg4[%c448, %c0_16] : memref<576x128xbf16, #tpu.memory_space<vmem>>, vector<64x128xbf16>
    %cst_17 = arith.constant dense<0.000000e+00> : vector<64x128xf32>
    %40 = tpu.matmul %38, %39, %cst_17 {dimension_numbers = #tpu.dot_dimension_numbers<[1], [0], [0], [1], [0, 0, 1, 1], [], []>} : vector<64x64xbf16>, vector<64x128xbf16>, vector<64x128xf32> -> vector<64x128xf32>
    %41 = arith.addf %36, %40 : vector<64x128xf32>
    %42 = vector.extract_strided_slice %2 {offsets = [0, 2, 2, 0], sizes = [1, 8, 8, 64], strides = [1, 1, 1, 1]} : vector<1x10x10x64xbf16> to vector<1x8x8x64xbf16>
    %43 = vector.shape_cast %42 : vector<1x8x8x64xbf16> to vector<64x64xbf16>
    %c512 = arith.constant 512 : index
    %c0_18 = arith.constant 0 : index
    %44 = vector.load %arg4[%c512, %c0_18] : memref<576x128xbf16, #tpu.memory_space<vmem>>, vector<64x128xbf16>
    %cst_19 = arith.constant dense<0.000000e+00> : vector<64x128xf32>
    %45 = tpu.matmul %43, %44, %cst_19 {dimension_numbers = #tpu.dot_dimension_numbers<[1], [0], [0], [1], [0, 0, 1, 1], [], []>} : vector<64x64xbf16>, vector<64x128xbf16>, vector<64x128xf32> -> vector<64x128xf32>
    %46 = arith.addf %41, %45 : vector<64x128xf32>
    %c0_20 = arith.constant 0 : index
    %c0_21 = arith.constant 0 : index
    %47 = vector.load %arg5[%c0_20, %c0_21] : memref<1x128xf32, #tpu.memory_space<vmem>>, vector<1x128xf32>
    %48 = vector.broadcast %47 : vector<1x128xf32> to vector<64x128xf32>
    %49 = arith.addf %46, %48 : vector<64x128xf32>
    %50 = vector.shape_cast %49 : vector<64x128xf32> to vector<1x8x8x128xf32>
    %51 = arith.truncf %50 : vector<1x8x8x128xf32> to vector<1x8x8x128xbf16>
    %c0_22 = arith.constant 0 : index
    %c0_23 = arith.constant 0 : index
    %c0_24 = arith.constant 0 : index
    %c0_25 = arith.constant 0 : index
    %52 = vector.load %arg6[%c0_22, %c0_23, %c0_24, %c0_25] : memref<1x8x8x128xbf16, #tpu.memory_space<vmem>>, vector<1x8x8x128xbf16>
    tpu.vector_store %arg6[%c0_22, %c0_23, %c0_24, %c0_25], %51 {strides = array<i32>} : memref<1x8x8x128xbf16, #tpu.memory_space<vmem>>, vector<1x8x8x128xbf16>,
    return
  }
  func.func @transform_0(%arg0: i32, %arg1: i32, %arg2: i32) -> (i32, i32, i32, i32) {
    %c0_i32 = arith.constant 0 : i32
    %c0_i32_0 = arith.constant 0 : i32
    %c0_i32_1 = arith.constant 0 : i32
    %c0_i32_2 = arith.constant 0 : i32
    return %arg0, %c0_i32, %c0_i32_0, %c0_i32_1 : i32, i32, i32, i32
  }
  func.func @transform_1(%arg0: i32, %arg1: i32, %arg2: i32) -> (i32, i32) {
    %c0_i32 = arith.constant 0 : i32
    %c0_i32_0 = arith.constant 0 : i32
    return %c0_i32, %arg2 : i32, i32
  }
  func.func @transform_2(%arg0: i32, %arg1: i32, %arg2: i32) -> (i32, i32) {
    %c0_i32 = arith.constant 0 : i32
    %c0_i32_0 = arith.constant 0 : i32
    return %c0_i32, %arg2 : i32, i32
  }
  func.func @transform_3(%arg0: i32, %arg1: i32, %arg2: i32) -> (i32, i32, i32, i32) {
    %c0_i32 = arith.constant 0 : i32
    %c0_i32_0 = arith.constant 0 : i32
    return %arg0, %arg1, %c0_i32, %arg2 : i32, i32, i32, i32
  }
}

</mosaic_0001>

<bundles_post_ra>
// kernel: tpu_custom_call.1
= control target key start
LH: loop header
LB: loop body
LE: loop exit
PB: predicated region body
PF: predicated region fallthrough
CT: control target
= control target key end

     0   :  { %8 = vsyncpa [#allocation3], 0  ;;  %s2764_s0 = inlined_call_operand.vmem [shape: bf16[2,10,10,64], index: 0, kind: input, shape index: {}]   ;;  %s2765_s1 = inlined_call_operand.hbm [shape: bf16[576,128], index: 1, kind: input, shape index: {}]   ;;  %s2766_s2 = inlined_call_operand.vmem [shape: f32[1,128], index: 2, kind: input, shape index: {}]   ;;  %s2767_s3 = inlined_call_operand.hbm [shape: bf16[2,8,8,128], index: 3, kind: output, shape index: {}]  }
   0x1   :  { %9 = vsyncpa [#allocation4], 0 }
   0x2   :  { %11 = vsyncpa [#allocation4 + $0x1], 0  ;;  %s2304_s12 = smov 0   ;;  %s2306_s13 = smov 0  }
   0x3   :  { %s2308_s14 = smov 0   ;;  %s2310_s15 = smov 0  }
   0x4   :  { %s2312_s16 = smov 0   ;;  %s2314_s17 = smov 0  }
   0x5 LB: > { %s1681_s18 = sadd.s32 4294967295, %s2276_s17   ;;  %s1682_s19 = sadd.s32 4294967294, %s2276_s17   ;;  %s2276_s17 = sphi %s2314_s17, %s17_s17   ;;  %s2272_s16 = sphi %s2312_s16, %s2786_s16   ;;  %s2268_s15 = sphi %s2310_s15, %s2785_s15   ;;  %s2264_s14 = sphi %s2308_s14, %s2784_s14   ;;  %s2260_s13 = sphi %s2306_s13, %s2783_s13   ;;  %s2256_s12 = sphi %s2304_s12, %s2782_s12  }
   0x6   : > { %s36_s20 = sadd.s32 1, %s2272_s16  ;;  %s125_s21 = sadd.s32 1, %s2264_s14 }
   0x7   : > { %p38_p0 = scmp.ge.s32.totalorder %s36_s20, 2  ;;  %p135_p1 = scmp.ne.s32.totalorder %s2264_s14, %s2260_s13 }
   0x8   : > { %p136_p2 = scmp.eq.s32.totalorder %s1681_s18, 1  ;;  %p141_p3 = scmp.ne.s32.totalorder %s2260_s13, %s2256_s12 }
   0x9   : > { %s2788_s20 = smov (%p38_p0, %s36_s20), 0  ;;  %p142_p5 = scmp.eq.s32.totalorder %s1682_s19, 1 }
   0xa   : > { %p2344_p4 = por %p136_p2, %p135_p1  ;;  %s118_s23 = ssub.s32 %s2272_s16, %s2788_s20 }
   0xb   : > { %p1683_p6 = scmp.ge.s32.totalorder %s2276_s17, 1  ;;  %p123_p7 = scmp.eq.s32.totalorder %s118_s23, 0 }
   0xc   : > { %p2351_p8 = por %p142_p5, %p141_p3  ;;  %p149_p9 = scmp.lt.s32.totalorder %s2276_s17, 3 }
   0xd   : > { %s2357_s25 = scalar_select %p123_p7, %s2264_s14, %s125_s21  }
   0xe   : > { %p2359_p10 = pnand %p1683_p6, %p149_p9  ;;  %p2363_p11 = scmp.eq.s32.totalorder %s1681_s18, 0 }
   0xf   : > { %s2278_s28 = smov [#allocation2]  }
  0x10   : > { %p2061_p12 = pneg %p2359_p10  ;;  %s163_s29 = sshll.u32 %s2278_s28, 4  ;;  %s164_s29 = int_to_ptr.vmem [resolvable:$true] %s163_s29 }
  0x11   : > { %s2181_s30 = scalar_lea.vmem %s164_s29, 4608  ;;  %p2189_p5 = scmp.lt.s32.totalorder %s164_s29, %s164_s29 }
  0x12   : > { %p2062_p13 = pnand %p2363_p11, %p2061_p12  ;;  %p2182_p1 = scmp.ne.s32.totalorder %s164_s29, %s2181_s30 }
  0x13   : > { %p2190_p6 = scmp.lt.s32.totalorder %s2181_s30, %s2181_s30 }
  0x14   : > { %p2172_p0 = pneg %p2062_p13 }
  0x15   : > { %p2191_p7 = por %p2190_p6, %p2189_p5 }
  0x16   : > { %p2184_p2 = pnand %p2182_p1, %p2172_p0 }
  0x18   : > { %p2185_p3 = pneg %p2184_p2 }
  0x1a   : > { %p2192_p9 = pnand %p2191_p7, %p2185_p3 }
  0x1c   : > { %2195 = shalt.err (!%p2192_p9)
}
  0x1d   : > { %s2279_s4 = smov 64   ;;  %s2280_s5 = smov 4  }
  0x1e   : > { %2064 = dma.hbm_to_vmem [thread:$0]  (!%p2062_p13), %s2765_s1, 4608, %s164_s29, [#allocation3], %s2279_s4, %s2279_s4, %s2280_s5  }
  0x1f   : > { %193 = sbr.rel (%p2359_p10) target bundleno = 349 (0x15d), region = 32 }
  0x24   : > { %2247 = dma.done.wait (%p2363_p11), [#allocation3], 4608  }
  0x25   : > { %2249 = vsyncadd (%p2363_p11), [#allocation3], 4294962688  ;;  %p220_p12 = scmp.lt.s32.totalorder %s2268_s15, 1  ;;  %v2125_v0 = vld [vmem:[#allocation2 + $0x38] sm:$0xff]   ;;  %v2127_v2 = vld [vmem:[#allocation2 + $0x30] sm:$0xff]   ;;  %vm421_vm1 = vcmask 523264  }
  0x26   : > { %v2126_v1 = vld [vmem:[#allocation2 + $0x18] sm:$0xff]   ;;  %1902 = vmatprep.subr.bf16.mxu0 %v2125_v0  ;;  %v2128_v3 = vld [vmem:[#allocation2 + $0x10] sm:$0xff]   ;;  %v2129_v4 = vld [vmem:[#allocation2 + $0x28] sm:$0xff]   ;;  %vm262_vm0 = vsmask.f32 3328  ;;  %vm628_vm4 = vcmask 1042432  }
  0x27   : > { %s221_s8 = scalar_select %p220_p12, %s2268_s15, 1  ;;  %1918 = vmatprep.subr.bf16.mxu1 %v2126_v1  ;;  %1903 = vmatpush3.bf16.msra.mxu0 %v2125_v0  ;;  %v2130_v5 = vld [vmem:[#allocation2 + $0x8] sm:$0xff]   ;;  %v2131_v6 = vld [vmem:[#allocation2 + $0x20] sm:$0xff]   ;;  %vm263_vm2 = vsmask.f32 7440  ;;  %v2135_v34 = vld [vmem:[#allocation2 + $0x58] sm:$0xff]  }
  0x28   : > { %1919 = vmatpush3.bf16.msra.mxu1 %v2126_v1  ;;  %1904 = vmatprep.subr.bf16.mxu0 %v2127_v2  ;;  %v2132_v10 = vld [vmem:[#allocation2] sm:$0xff]   ;;  %v2136_v35 = vld [vmem:[#allocation2 + $0x78] sm:$0xff]   ;;  %vm2433_vm3 = vmor %vm262_vm0, %vm263_vm2  ;;  %vm629_vm5 = vcmask 1046532   ;;  %s217_s19 = sand.u32 1, %s2260_s13   ;;  %s1806_s29 = sshll.u32 %s2268_s15, 9 }
  0x29   : > { %s2054_s9 = smul.u32 80, %s221_s8  ;;  %1920 = vmatprep.subr.bf16.mxu1 %v2128_v3  ;;  %v2137_v0 = vld [vmem:[#allocation2 + $0x50] sm:$0xff]   ;;  %vm2517_vm6 = vmor %vm628_vm4, %vm629_vm5  ;;  %s1689_s26 = sshll.u32 %s217_s19, 5 }
  0x2a   : > { %v2138_v1 = vld [vmem:[#allocation2 + $0x70] sm:$0xff]   ;;  %s219_s27 = scalar_lea.vmem [#allocation5], %s1689_s26  ;;  %s2715_s5 = scalar_lea.hbm %s2767_s3, %s1806_s29 }
  0x2b   : > { %s2385_s18 = scalar_lea.vmem %s2764_s0, %s2054_s9  ;;  %1905 = vmatpush3.bf16.msra.mxu0 %v2127_v2  ;;  %s1576_s28 = sshll.u32 %s219_s27, 4  ;;  %s2710_s28 = int_to_ptr.vmem [resolvable:$true] %s1576_s28 }
  0x2c   : > { %1921 = vmatpush3.bf16.msra.mxu1 %v2128_v3  ;;  %1906 = vmatprep.subr.bf16.mxu0 %v2129_v4  ;;  %v2388_v7 = vld [vmem:[%s2385_s18] sm:$0xf]  ;;  %v2391_v8 = vld [vmem:[%s2385_s18 + $0x4] sm:$0x1]  ;;  %v2394_v9 = vld [vmem:[%s2385_s18 + $0x8] sm:$0xf] }
  0x2d   : > { %1922 = vmatprep.subr.bf16.mxu1 %v2130_v5  ;;  %v2397_v11 = vld [vmem:[%s2385_s18 + $0xc] sm:$0x1]  ;;  %v2400_v12 = vld [vmem:[%s2385_s18 + $0x10] sm:$0xf]  ;;  %v1703_v13 = vcombine.low %v2388_v7, %v2394_v9  ;;  %v2405_v14 = vld [vmem:[%s2385_s18 + $0x14] sm:$0x1] }
  0x2e   : > { %v2408_v15 = vld [vmem:[%s2385_s18 + $0x18] sm:$0xf]  ;;  %v2411_v16 = vld [vmem:[%s2385_s18 + $0x1c] sm:$0x1]  ;;  %v2414_v17 = vld [vmem:[%s2385_s18 + $0x20] sm:$0xf] }
  0x2f   : > { %1907 = vmatpush3.bf16.msra.mxu0 %v2129_v4  ;;  %v266_v18 = vshrl.u32 %v2388_v7, 16  ;;  %v269_v19 = vshll.u32 %v2388_v7, 16  ;;  %v275_v20 = vshll.u32 %v2391_v8, 16  ;;  %v280_v21 = vshrl.u32 %v2394_v9, 16  ;;  %1926 = vmatprep.mubr.msk.bf16.mxu1 %vm421_vm1, %v1703_v13  ;;  %v2426_v36 = vld [vmem:[%s2385_s18 + $0x24] sm:$0x1] }
  0x30   : > { %1923 = vmatpush3.bf16.msra.mxu1 %v2130_v5  ;;  %1908 = vmatprep.subr.bf16.mxu0 %v2131_v6  ;;  %v283_v22 = vshll.u32 %v2394_v9, 16  ;;  %v289_v23 = vshll.u32 %v2397_v11, 16  ;;  %v294_v24 = vshrl.u32 %v2400_v12, 16  ;;  %v297_v25 = vshll.u32 %v2400_v12, 16  ;;  %v2453_v63 = vld [vmem:[%s2385_s18 + $0x28] sm:$0xf] }
  0x31   : > { %1924 = vmatprep.subr.bf16.mxu1 %v2132_v10  ;;  %v268_v26 = vrot.slane %v266_v18, 4  ;;  %v271_v27 = vrot.slane %v269_v19, 5  ;;  %v277_v28 = vrot.slane %v275_v20, 5  ;;  %v282_v29 = vrot.slane %v280_v21, 4  ;;  %v2456_v2 = vld [vmem:[%s2385_s18 + $0x2c] sm:$0x1] }
  0x32   : > { %v285_v30 = vrot.slane %v283_v22, 5  ;;  %v291_v31 = vrot.slane %v289_v23, 5  ;;  %v296_v32 = vrot.slane %v294_v24, 4  ;;  %v299_v33 = vrot.slane %v297_v25, 5  ;;  %v2459_v3 = vld [vmem:[%s2385_s18 + $0x30] sm:$0xf] }
  0x33   : > { %1909 = vmatpush3.bf16.msra.mxu0 %v2131_v6  ;;  %v272_v37 = vor.u32 %v271_v27, %v268_v26  ;;  %v303_v38 = vshll.u32 %v2405_v14, 16  ;;  %v308_v39 = vshrl.u32 %v2408_v15, 16  ;;  %v311_v40 = vshll.u32 %v2408_v15, 16  ;;  %v2474_v13 = vld [vmem:[%s2385_s18 + $0x38] sm:$0xf]  ;;  %s2719_s6 = scalar_lea.sflag [#allocation4], %s217_s19 }
  0x34   : > { %1925 = vmatpush3.bf16.msra.mxu1 %v2132_v10  ;;  %v286_v42 = vor.u32 %v285_v30, %v282_v29  ;;  %v300_v43 = vor.u32 %v299_v33, %v296_v32  ;;  %v317_v44 = vshll.u32 %v2411_v16, 16  ;;  %v322_v45 = vshrl.u32 %v2414_v17, 16  ;;  %1934 = vmatprep.subr.bf16.mxu0 %v2135_v34  ;;  %v2471_v10 = vld [vmem:[%s2385_s18 + $0x34] sm:$0x1]  ;;  %v2482_v21 = vld [vmem:[%s2385_s18 + $0x3c] sm:$0x1] }
  0x35   : > { %v273_v46 = vrot.slane %v272_v37, 4  ;;  %v305_v47 = vrot.slane %v303_v38, 5  ;;  %v310_v48 = vrot.slane %v308_v39, 4  ;;  %v313_v49 = vrot.slane %v311_v40, 5  ;;  %1950 = vmatprep.subr.bf16.mxu1 %v2136_v35  ;;  %v2142_v32 = vld [vmem:[#allocation2 + $0x68] sm:$0xff]   ;;  %s2196_s15 = scalar_lea.vmem %s2710_s28, 512 }
  0x36   : > { %v287_v50 = vrot.slane %v286_v42, 4  ;;  %v301_v51 = vrot.slane %v300_v43, 4  ;;  %v319_v52 = vrot.slane %v317_v44, 5  ;;  %v324_v55 = vrot.slane %v322_v45, 4  ;;  %v2144_v44 = vld [vmem:[#allocation2 + $0x60] sm:$0xff]   ;;  %p2197_p10 = scmp.ne.s32.totalorder %s2710_s28, %s2196_s15  ;;  %s2281_s7 = smov [#allocation5]  }
  0x37   : > { %v278_v53 = vsel %vm2433_vm3, %v273_v46, %v277_v28  ;;  %v314_v54 = vor.u32 %v313_v49, %v310_v48  ;;  %v325_v56 = vshll.u32 %v2414_v17, 16  ;;  %v331_v58 = vshll.u32 %v2426_v36, 16  ;;  %v2143_v48 = vld [vmem:[#allocation2 + $0x40] sm:$0xff]   ;;  %s2200_s8 = sshll.u32 %s2281_s7, 4  ;;  %s2201_s8 = int_to_ptr.vmem [resolvable:$false] %s2200_s8 }
  0x38   : > { %v2444_v57 = vsel %vm2433_vm3, %v287_v50, %v291_v31  ;;  %v2449_v59 = vsel %vm2433_vm3, %v301_v51, %v305_v47  ;;  %v2468_v6 = vcombine.low %v2400_v12, %v2408_v15  ;;  %v336_v20 = vshrl.u32 %v2453_v63, 16  ;;  %p2198_p11 = pnand %p2197_p10, %p2344_p4  ;;  %s2202_s9 = scalar_lea.vmem %s2201_s8, 1024 }
  0x39   : > { %v315_v60 = vrot.slane %v314_v54, 4  ;;  %v327_v61 = vrot.slane %v325_v56, 5  ;;  %v1691_v62 = vcombine.low %v278_v53, %v2444_v57  ;;  %v333_v18 = vrot.slane %v331_v58, 5  ;;  %p2203_p0 = scmp.lt.s32.totalorder %s2710_s28, %s2201_s8  ;;  %p2204_p1 = scmp.lt.s32.totalorder %s2202_s9, %s2196_s15 }
  0x3a   : > { %v633_v23 = vrot.slane %v2391_v8, 5  ;;  %1927 = vmatmul.mubr.msk.bf16.vlgmr.msra.gmra.mxu1 %vm421_vm1, %v2468_v6  ;;  %v339_v24 = vshll.u32 %v2453_v63, 16  ;;  %v345_v25 = vshll.u32 %v2456_v2, 16  ;;  %v338_v26 = vrot.slane %v336_v20, 4  ;;  %p2199_p13 = pneg %p2198_p11 }
  0x3b   : > { %v2463_v4 = vsel %vm2433_vm3, %v315_v60, %v319_v52  ;;  %v328_v5 = vor.u32 %v327_v61, %v324_v55  ;;  %1910 = vmatprep.mubr.msk.bf16.mxu0 %vm421_vm1, %v1691_v62  ;;  %1951 = vmatpush3.bf16.msra.mxu1 %v2136_v35  ;;  %v2493_v27 = vcombine.low %v2414_v17, %v2453_v63  ;;  %v350_v28 = vshrl.u32 %v2459_v3, 16  ;;  %p2205_p2 = por %p2204_p1, %p2203_p0 }
  0x3c   : > { %v2478_v19 = vcombine.low %v2449_v59, %v2463_v4  ;;  %v353_v8 = vshll.u32 %v2459_v3, 16  ;;  %v637_v29 = vrot.slane %v2397_v11, 5  ;;  %1952 = vmatprep.subr.bf16.mxu1 %v2138_v1  ;;  %v341_v30 = vrot.slane %v339_v24, 5 }
  0x3d   : > { %v329_v22 = vrot.slane %v328_v5, 4  ;;  %v359_v31 = vshll.u32 %v2471_v10, 16  ;;  %v1735_v33 = vcombine.low %v2394_v9, %v2400_v12  ;;  %1930 = vmatprep.mubr.msk.bf16.mxu1 %vm421_vm1, %v2493_v27  ;;  %v352_v37 = vrot.slane %v350_v28, 4  ;;  %p2206_p3 = pnand %p2205_p2, %p2199_p13 }
  0x3e   : > { %1911 = vmatmul.mubr.msk.bf16.vlgmr.msra.gmra.mxu0 %vm421_vm1, %v2478_v19  ;;  %v355_v38 = vrot.slane %v353_v8, 5  ;;  %v364_v11 = vshrl.u32 %v2474_v13, 16  ;;  %v342_v39 = vor.u32 %v341_v30, %v338_v26  ;;  %v347_v40 = vrot.slane %v345_v25, 5  ;;  %v2580_v30 = vld [vmem:[%s2385_s18 + $0x40] sm:$0xf] }
  0x3f   : > { %1935 = vmatpush3.bf16.msra.mxu0 %v2135_v34  ;;  %v2503_v35 = vsel %vm2433_vm3, %v329_v22, %v333_v18  ;;  %v2141_v34 = vld [vmem:[#allocation2 + $0x48] sm:$0xff]   ;;  %v367_v42 = vshll.u32 %v2474_v13, 16  ;;  %v373_v43 = vshll.u32 %v2482_v21, 16  ;;  %1953 = vmatpush3.bf16.msra.mxu1 %v2138_v1  ;;  %v2512_v47 = vcombine.low %v2459_v3, %v2474_v13  ;;  %v2148_v18 = vld [vmem:[#allocation2 + $0xb8] sm:$0xff]  }
  0x40   : > { %1936 = vmatprep.subr.bf16.mxu0 %v2137_v0  ;;  %v356_v45 = vor.u32 %v355_v38, %v352_v37  ;;  %v366_v46 = vrot.slane %v364_v11, 4  ;;  %v1715_v49 = vrot.slane %v2388_v7, 9  ;;  %v343_v51 = vrot.slane %v342_v39, 4  ;;  %1954 = vmatprep.subr.bf16.mxu1 %v2142_v32  ;;  %v2147_v22 = vld [vmem:[#allocation2 + $0x98] sm:$0xff]   ;;  %v2149_v39 = vld [vmem:[#allocation2 + $0x90] sm:$0xff]  }
  0x41   : > { %v361_v52 = vrot.slane %v359_v31, 5  ;;  %v369_v53 = vrot.slane %v367_v42, 5  ;;  %v1716_v54 = vrot.slane %v2394_v9, 9  ;;  %v375_v56 = vrot.slane %v373_v43, 5  ;;  %v2154_v31 = vld [vmem:[#allocation2 + $0xa8] sm:$0xff]  }
  0x42   : > { %v357_v55 = vrot.slane %v356_v45, 4  ;;  %v2524_v58 = vsel %vm2433_vm3, %v343_v51, %v347_v40  ;;  %1931 = vmatmul.mubr.msk.bf16.gmra.mxu1 %vm421_vm1, %v2512_v47  ;;  %v1717_v60 = vrot.slane %v2400_v12, 9  ;;  %v634_v9 = vsel %vm2517_vm6, %v1715_v49, %v633_v23 }
  0x43   : > { %1937 = vmatpush3.bf16.msra.mxu0 %v2137_v0  ;;  %v370_v7 = vor.u32 %v369_v53, %v366_v46  ;;  %v2531_v61 = vcombine.low %v2503_v35, %v2524_v58  ;;  %1955 = vmatpush3.bf16.msra.mxu1 %v2142_v32  ;;  %v2537_v62 = vsel %vm2517_vm6, %v1716_v54, %v637_v29  ;;  %v641_v0 = vrot.slane %v2405_v14, 5  ;;  %v2150_v29 = vld [vmem:[#allocation2 + $0xb0] sm:$0xff]   ;;  %v2158_v46 = vld [vmem:[#allocation2 + $0xf8] sm:$0xff]   ;;  %v2155_v53 = vld [vmem:[#allocation2 + $0x80] sm:$0xff]  }
  0x44   : > { %1938 = vmatprep.subr.bf16.mxu0 %v2141_v34  ;;  %1958 = vmatprep.mubr.msk.bf16.mxu1 %vm421_vm1, %v1735_v33  ;;  %v1718_v1 = vrot.slane %v2408_v15, 9  ;;  %v2544_v12 = vsel %vm2433_vm3, %v357_v55, %v361_v52  ;;  %v645_v20 = vrot.slane %v2411_v16, 5  ;;  %v1719_v23 = vrot.slane %v2414_v17, 9  ;;  %v251_v54 = vld [vmem:[%s2385_s18 + $0x44] sm:$0x1] }
  0x45   : > { %v371_v5 = vrot.slane %v370_v7, 4  ;;  %1956 = vmatprep.subr.bf16.mxu1 %v2144_v44  ;;  %1914 = vmatprep.mubr.msk.bf16.mxu0 %vm421_vm1, %v2531_v61  ;;  %v649_v14 = vrot.slane %v2426_v36, 5  ;;  %v1723_v25 = vcombine.low %v634_v9, %v2537_v62  ;;  %v1736_v26 = vcombine.low %v2408_v15, %v2414_v17  ;;  %v2614_v9 = vld [vmem:[%s2385_s18 + $0x48] sm:$0xf] }
  0x46   : > { %v1720_v28 = vrot.slane %v2453_v63, 9  ;;  %v653_v8 = vrot.slane %v2456_v2, 5  ;;  %v1737_v36 = vcombine.low %v2453_v63, %v2459_v3  ;;  %v642_v15 = vsel %vm2517_vm6, %v1717_v60, %v641_v0  ;;  %v2160_v60 = vld [vmem:[#allocation2 + $0xf0] sm:$0xff]  }
  0x47   : > { %1939 = vmatpush3.bf16.msra.mxu0 %v2141_v34  ;;  %v2553_v24 = vsel %vm2433_vm3, %v371_v5, %v375_v56  ;;  %1957 = vmatpush3.bf16.msra.mxu1 %v2144_v44  ;;  %v646_v17 = vsel %vm2517_vm6, %v1718_v1, %v645_v20  ;;  %v650_v63 = vsel %vm2517_vm6, %v1719_v23, %v649_v14  ;;  %v1721_v33 = vrot.slane %v2459_v3, 9  ;;  %v2156_v3 = vld [vmem:[#allocation2 + $0xa0] sm:$0xff]   ;;  %v2153_v44 = vld [vmem:[#allocation2 + $0x88] sm:$0xff]  }
  0x48   : > { %1940 = vmatprep.subr.bf16.mxu0 %v2143_v48  ;;  %v2560_v16 = vcombine.low %v2544_v12, %v2553_v24  ;;  %1982 = vmatprep.subr.bf16.mxu1 %v2148_v18  ;;  %v654_v2 = vsel %vm2517_vm6, %v1720_v28, %v653_v8  ;;  %v2582_v32 = vcombine.low %v642_v15, %v646_v17  ;;  %v657_v37 = vrot.slane %v2471_v10, 5  ;;  %v2162_v20 = vld [vmem:[#allocation2 + $0xe8] sm:$0xff]  }
  0x49   : > { %v2586_v38 = vcombine.low %v650_v63, %v654_v2  ;;  %v1722_v11 = vrot.slane %v2474_v13, 9  ;;  %v661_v34 = vrot.slane %v2482_v21, 5  ;;  %v1738_v40 = vcombine.low %v2474_v13, %v2580_v30 }
  0x4a   : > { %1915 = vmatmul.mubr.msk.bf16.gmra.mxu0 %vm421_vm1, %v2560_v16  ;;  %1959 = vmatmul.mubr.msk.bf16.vlgmr.msra.gmra.mxu1 %vm421_vm1, %v1736_v26  ;;  %v1760_v42 = vcombine.low %v2537_v62, %v642_v15  ;;  %v658_v10 = vsel %vm2517_vm6, %v1721_v33, %v657_v37  ;;  %v916_v43 = vshrl.u32 %v2580_v30, 16  ;;  %v919_v13 = vshll.u32 %v2580_v30, 16  ;;  %v2157_v62 = vld [vmem:[#allocation2 + $0xd8] sm:$0xff]   ;;  %v2166_v33 = vld [vmem:[#allocation2 + $0x110] sm:$0xff]  }
  0x4b   : > { %1941 = vmatpush3.bf16.msra.mxu0 %v2143_v48  ;;  %1942 = vmatprep.mubr.msk.bf16.mxu0 %vm421_vm1, %v1723_v25  ;;  %v662_v21 = vsel %vm2517_vm6, %v1722_v11, %v661_v34  ;;  %v1747_v48 = vcombine.low %v2444_v57, %v2449_v59  ;;  %v1761_v52 = vcombine.low %v646_v17, %v650_v63  ;;  %v1759_v56 = vrot.slane %v2580_v30, 9  ;;  %v2159_v25 = vld [vmem:[#allocation2 + $0xd0] sm:$0xff]   ;;  %v2165_v17 = vld [vmem:[#allocation2 + $0x118] sm:$0xff]   ;;  %v2163_v63 = vld [vmem:[#allocation2 + $0xc0] sm:$0xff]  }
  0x4c   : > { %1966 = vmatprep.subr.bf16.mxu0 %v2147_v22  ;;  %1983 = vmatpush3.bf16.msra.mxu1 %v2148_v18  ;;  %v2605_v45 = vcombine.low %v658_v10, %v662_v21  ;;  %v918_v49 = vrot.slane %v916_v43, 4  ;;  %v921_v51 = vrot.slane %v919_v13, 5  ;;  %v1762_v55 = vcombine.low %v654_v2, %v658_v10 }
  0x4d   : > { %1962 = vmatprep.mubr.msk.bf16.mxu1 %vm421_vm1, %v1737_v36  ;;  %1984 = vmatprep.subr.bf16.mxu1 %v2150_v29  ;;  %v1054_v7 = vrot.slane %v251_v54, 5  ;;  %v925_v59 = vshll.u32 %v251_v54, 16  ;;  %v1290_v1 = vshrl.u32 %v2614_v9, 16  ;;  %v1293_v5 = vshll.u32 %v2614_v9, 16  ;;  %v253_v36 = vld [vmem:[%s2385_s18 + $0x4c] sm:$0x1] }
  0x4e   : > { %v922_v57 = vor.u32 %v921_v51, %v918_v49  ;;  %v1748_v18 = vcombine.low %v2463_v4, %v2503_v35  ;;  %v2164_v4 = vld [vmem:[#allocation2 + $0xe0] sm:$0xff]   ;;  %v1790_v11 = vrot.slane %v2614_v9, 9  ;;  %v1416_v34 = vrot.slane %v253_v36, 5 }
  0x4f   : > { %v2621_v0 = vsel %vm2517_vm6, %v1759_v56, %v1054_v7  ;;  %v927_v14 = vrot.slane %v925_v59, 5  ;;  %v1292_v28 = vrot.slane %v1290_v1, 4  ;;  %v1295_v8 = vrot.slane %v1293_v5, 5 }
  0x50   : > { %1985 = vmatpush3.bf16.msra.mxu1 %v2150_v29  ;;  %v923_v23 = vrot.slane %v922_v57, 4  ;;  %v1763_v26 = vcombine.low %v662_v21, %v2621_v0  ;;  %v1299_v29 = vshll.u32 %v253_v36, 16  ;;  %v1417_v41 = vsel %vm2517_vm6, %v1790_v11, %v1416_v34 }
  0x51   : > { %1986 = vmatprep.subr.bf16.mxu1 %v2154_v31 }
  0x52   : > { %1943 = vmatmul.mubr.msk.bf16.vlgmr.msra.gmra.mxu0 %vm421_vm1, %v2582_v32  ;;  %1963 = vmatmul.mubr.msk.bf16.gmra.mxu1 %vm421_vm1, %v1738_v40  ;;  %v928_v35 = vsel %vm2433_vm3, %v923_v23, %v927_v14 }
  0x53   : > { %1967 = vmatpush3.bf16.msra.mxu0 %v2147_v22  ;;  %1946 = vmatprep.mubr.msk.bf16.mxu0 %vm421_vm1, %v2586_v38  ;;  %v1749_v22 = vcombine.low %v2524_v58, %v2544_v12  ;;  %v2161_v58 = vld [vmem:[#allocation2 + $0xc8] sm:$0xff]   ;;  %v1296_v12 = vor.u32 %v1295_v8, %v1292_v28  ;;  %v1750_v15 = vcombine.low %v2553_v24, %v928_v35 }
  0x54   : > { %1968 = vmatprep.subr.bf16.mxu0 %v2149_v39  ;;  %1987 = vmatpush3.bf16.msra.mxu1 %v2154_v31  ;;  %v1301_v31 = vrot.slane %v1299_v29, 5  ;;  %v2168_v24 = vld [vmem:[#allocation2 + $0x108] sm:$0xff]  }
  0x55   : > { %1990 = vmatprep.mubr.msk.bf16.mxu1 %vm421_vm1, %v1760_v42  ;;  %1988 = vmatprep.subr.bf16.mxu1 %v2156_v3  ;;  %v1297_v2 = vrot.slane %v1296_v12, 4 }
  0x57   : > { %1969 = vmatpush3.bf16.msra.mxu0 %v2149_v39 }
  0x58   : > { %1970 = vmatprep.subr.bf16.mxu0 %v2153_v44  ;;  %1989 = vmatpush3.bf16.msra.mxu1 %v2156_v3 }
  0x59   : > { %2014 = vmatprep.subr.bf16.mxu1 %v2158_v46 }
  0x5a   : > { %1947 = vmatmul.mubr.msk.bf16.gmra.mxu0 %vm421_vm1, %v2605_v45 }
  0x5b   : > { %1971 = vmatpush3.bf16.msra.mxu0 %v2153_v44  ;;  %1974 = vmatprep.mubr.msk.bf16.mxu0 %vm421_vm1, %v1747_v48 }
  0x5c   : > { %1972 = vmatprep.subr.bf16.mxu0 %v2155_v53  ;;  %1991 = vmatmul.mubr.msk.bf16.vlgmr.msra.gmra.mxu1 %vm421_vm1, %v1761_v52 }
  0x5d   : > { %2015 = vmatpush3.bf16.msra.mxu1 %v2158_v46  ;;  %1994 = vmatprep.mubr.msk.bf16.mxu1 %vm421_vm1, %v1762_v55 }
  0x5e   : > { %2016 = vmatprep.subr.bf16.mxu1 %v2160_v60 }
  0x5f   : > { %1973 = vmatpush3.bf16.msra.mxu0 %v2155_v53 }
  0x60   : > { %1998 = vmatprep.subr.bf16.mxu0 %v2157_v62 }
  0x61   : > { %2017 = vmatpush3.bf16.msra.mxu1 %v2160_v60 }
  0x62   : > { %1975 = vmatmul.mubr.msk.bf16.vlgmr.msra.gmra.mxu0 %vm421_vm1, %v1748_v18  ;;  %2018 = vmatprep.subr.bf16.mxu1 %v2162_v20 }
  0x63   : > { %1999 = vmatpush3.bf16.msra.mxu0 %v2157_v62  ;;  %1978 = vmatprep.mubr.msk.bf16.mxu0 %vm421_vm1, %v1749_v22 }
  0x64   : > { %2000 = vmatprep.subr.bf16.mxu0 %v2159_v25  ;;  %1995 = vmatmul.mubr.msk.bf16.gmra.mxu1 %vm421_vm1, %v1763_v26 }
  0x65   : > { %2019 = vmatpush3.bf16.msra.mxu1 %v2162_v20  ;;  %2022 = vmatprep.mubr.msk.bf16.mxu1 %vm421_vm1, %v2478_v19  ;;  %v1302_v19 = vsel %vm2433_vm3, %v1297_v2, %v1301_v31 }
  0x66   : > { %2020 = vmatprep.subr.bf16.mxu1 %v2164_v4  ;;  %v1781_v37 = vcombine.low %v928_v35, %v1302_v19 }
  0x67   : > { %2001 = vmatpush3.bf16.msra.mxu0 %v2159_v25 }
  0x68   : > { %2002 = vmatprep.subr.bf16.mxu0 %v2161_v58 }
  0x69   : > { %2021 = vmatpush3.bf16.msra.mxu1 %v2164_v4 }
  0x6a   : > { %1979 = vmatmul.mubr.msk.bf16.gmra.mxu0 %vm421_vm1, %v1750_v15  ;;  %2046 = vmatprep.subr.bf16.mxu1 %v2165_v17 }
  0x6b   : > { %2003 = vmatpush3.bf16.msra.mxu0 %v2161_v58  ;;  %2006 = vmatprep.mubr.msk.bf16.mxu0 %vm421_vm1, %v2468_v6  ;;  %v2169_v6 = vld [vmem:[#allocation2 + $0x100] sm:$0xff]  }
  0x6c   : > { %2004 = vmatprep.subr.bf16.mxu0 %v2163_v63  ;;  %2023 = vmatmul.mubr.msk.bf16.vlgmr.msra.gmra.mxu1 %vm421_vm1, %v2531_v61  ;;  %v1772_v61 = vcombine.low %v2580_v30, %v2614_v9 }
  0x6d   : > { %2050 = vmatpush3.bf16.msra.mxu1 %v2165_v17  ;;  %2026 = vmatprep.mubr.msk.bf16.mxu1 %vm421_vm1, %v2560_v16 }
  0x6e   : > { %2047 = vmatprep.subr.bf16.mxu1 %v2166_v33 }
  0x6f   : > { %2005 = vmatpush3.bf16.msra.mxu0 %v2163_v63 }
  0x70   : > { %2030 = vmatprep.subr.bf16.mxu0 %v2165_v17 }
  0x71   : > { %2051 = vmatpush3.bf16.msra.mxu1 %v2166_v33 }
  0x72   : > { %2007 = vmatmul.mubr.msk.bf16.vlgmr.msra.gmra.mxu0 %vm421_vm1, %v2493_v27  ;;  %2048 = vmatprep.subr.bf16.mxu1 %v2168_v24  ;;  %v1791_v27 = vcombine.low %v2621_v0, %v1417_v41 }
  0x73   : > { %2031 = vmatpush3.bf16.msra.mxu0 %v2165_v17  ;;  %2010 = vmatprep.mubr.msk.bf16.mxu0 %vm421_vm1, %v2512_v47 }
  0x74   : > { %2032 = vmatprep.subr.bf16.mxu0 %v2166_v33  ;;  %2027 = vmatmul.mubr.msk.bf16.gmra.mxu1 %vm421_vm1, %v1781_v37 }
  0x75   : > { %2052 = vmatpush3.bf16.msra.mxu1 %v2168_v24  ;;  %2042 = vmatprep.mubr.msk.bf16.mxu1 %vm421_vm1, %v2605_v45 }
  0x76   : > { %2049 = vmatprep.subr.bf16.mxu1 %v2169_v6 }
  0x77   : > { %2033 = vmatpush3.bf16.msra.mxu0 %v2166_v33 }
  0x78   : > { %2034 = vmatprep.subr.bf16.mxu0 %v2168_v24 }
  0x79   : > { %2053 = vmatpush3.bf16.msra.mxu1 %v2169_v6 }
  0x7a   : > { %2011 = vmatmul.mubr.msk.bf16.gmra.mxu0 %vm421_vm1, %v1772_v61 }
  0x7b   : > { %2035 = vmatpush3.bf16.msra.mxu0 %v2168_v24  ;;  %2038 = vmatprep.mubr.msk.bf16.mxu0 %vm421_vm1, %v2582_v32 }
  0x7c   : > { %2036 = vmatprep.subr.bf16.mxu0 %v2169_v6  ;;  %2043 = vmatmul.mubr.msk.bf16.vlgmr.msra.gmra.mxu1 %vm421_vm1, %v1791_v27 }
  0x7f   : > { %2037 = vmatpush3.bf16.msra.mxu0 %v2169_v6 }
  0x82   : > { %2039 = vmatmul.mubr.msk.bf16.vlgmr.msra.gmra.mxu0 %vm421_vm1, %v2586_v38 }
  0xfa   : > { %v1928_v47 = vpop.f32.mrf.mxu1 }
  0xfc   : > { %v589_v16 = vpop.f32.mrf.mxu1 }
  0xfe   : > { %v1912_v50 = vpop.f32.mrf.mxu0  ;;  %v1929_v39 = vpop.f32.mrf.mxu1 }
  0xff   : > { %v598_v33 = vadd.f32 %v1928_v47, %v1912_v50 }
 0x100   : > { %v468_v30 = vpop.f32.mrf.mxu0  ;;  %v592_v40 = vpop.f32.mrf.mxu1 }
 0x101   : > { %v590_v37 = vadd.f32 %v589_v16, %v468_v30 }
 0x102   : > { %v1913_v42 = vpop.f32.mrf.mxu0  ;;  %v1932_v3 = vpop.f32.mrf.mxu1 }
 0x103   : > { %v601_v11 = vadd.f32 %v1929_v39, %v1913_v42 }
 0x104   : > { %v605_v10 = vpop.f32.mrf.mxu1  ;;  %v471_v21 = vpop.f32.mrf.mxu0 }
 0x106   : > { %v1933_v43 = vpop.f32.mrf.mxu1 }
 0x108   : > { %v608_v13 = vpop.f32.mrf.mxu1 }
 0x10a   : > { %v1916_v32 = vpop.f32.mrf.mxu0  ;;  %v2667_v44 = vpop.f32.mrf.mxu1 }
 0x10b   : > { %v614_v12 = vadd.f32 %v1932_v3, %v1916_v32  ;;  %v593_v32 = vadd.f32 %v592_v40, %v471_v21 }
 0x10c   : > { %v484_v45 = vpop.f32.mrf.mxu0  ;;  %v2669_v46 = vpop.f32.mrf.mxu1 }
 0x10d   : > { %v606_v17 = vadd.f32 %v605_v10, %v484_v45 }
 0x10e   : > { %v1917_v48 = vpop.f32.mrf.mxu0  ;;  %v2671_v38 = vpop.f32.mrf.mxu1 }
 0x10f   : > { %v617_v19 = vadd.f32 %v1933_v43, %v1917_v48 }
 0x110   : > { %v487_v49 = vpop.f32.mrf.mxu0  ;;  %v2673_v51 = vpop.f32.mrf.mxu1 }
 0x111   : > { %v609_v41 = vadd.f32 %v608_v13, %v487_v49 }
 0x112   : > { %v1944_v52 = vpop.f32.mrf.mxu0  ;;  %v1964_v54 = vpop.f32.mrf.mxu1 }
 0x113   : > { %v786_v61 = vadd.f32 %v1944_v52, %v598_v33 }
 0x114   : > { %v753_v53 = vpop.f32.mrf.mxu0  ;;  %v892_v56 = vpop.f32.mrf.mxu1 }
 0x115   : > { %v909_v16 = vadd.f32 %v2667_v44, %v786_v61 }
 0x116   : > { %v1945_v55 = vpop.f32.mrf.mxu0  ;;  %v1965_v60 = vpop.f32.mrf.mxu1 }
 0x118   : > { %v756_v7 = vpop.f32.mrf.mxu0  ;;  %v895_v57 = vpop.f32.mrf.mxu1 }
 0x119   : > { %v785_v47 = vadd.f32 %v756_v7, %v593_v32 }
 0x11a   : > { %v1948_v9 = vpop.f32.mrf.mxu0 }
 0x11b   : > { %v790_v63 = vadd.f32 %v1948_v9, %v614_v12 }
 0x11c   : > { %v769_v59 = vpop.f32.mrf.mxu0  ;;  %v2675_v62 = vpop.f32.mrf.mxu1 }
 0x11d   : > { %v788_v24 = vadd.f32 %v769_v59, %v606_v17  ;;  %v913_v27 = vadd.f32 %v1964_v54, %v790_v63  ;;  %v908_v54 = vadd.f32 %v2673_v51, %v785_v47 }
 0x11e   : > { %v1949_v0 = vpop.f32.mrf.mxu0  ;;  %v2677_v1 = vpop.f32.mrf.mxu1 }
 0x11f   : > { %v791_v3 = vadd.f32 %v1949_v0, %v617_v19  ;;  %v911_v9 = vadd.f32 %v892_v56, %v788_v24 }
 0x120   : > { %v772_v5 = vpop.f32.mrf.mxu0  ;;  %v2679_v18 = vpop.f32.mrf.mxu1 }
 0x121   : > { %v789_v12 = vadd.f32 %v772_v5, %v609_v41  ;;  %v914_v30 = vadd.f32 %v1965_v60, %v791_v3 }
 0x122   : > { %v1976_v20 = vpop.f32.mrf.mxu0  ;;  %v2681_v22 = vpop.f32.mrf.mxu1 }
 0x123   : > { %v912_v21 = vadd.f32 %v895_v57, %v789_v12  ;;  %v1045_v49 = vadd.f32 %v1976_v20, %v909_v16 }
 0x124   : > { %v1012_v23 = vpop.f32.mrf.mxu0  ;;  %v1996_v14 = vpop.f32.mrf.mxu1 }
 0x126   : > { %v1977_v25 = vpop.f32.mrf.mxu0  ;;  %v1155_v26 = vpop.f32.mrf.mxu1 }
 0x128   : > { %v1015_v28 = vpop.f32.mrf.mxu0  ;;  %v1997_v8 = vpop.f32.mrf.mxu1 }
 0x129   : > { %v1044_v5 = vadd.f32 %v1015_v28, %v908_v54 }
 0x12a   : > { %v1980_v36 = vpop.f32.mrf.mxu0  ;;  %v1158_v4 = vpop.f32.mrf.mxu1 }
 0x12c   : > { %v1028_v35 = vpop.f32.mrf.mxu0  ;;  %v2683_v58 = vpop.f32.mrf.mxu1 }
 0x12d   : > { %2776 = vst [vmem:[#allocation8_spill] sm:$0xff] %v2683_v58  ;;  %v784_v58 = vadd.f32 %v753_v53, %v590_v37  ;;  %v1047_v39 = vadd.f32 %v1028_v35, %v911_v9 }
 0x12e   : > { %v1981_v29 = vpop.f32.mrf.mxu0  ;;  %v2685_v15 = vpop.f32.mrf.mxu1 }
 0x12f   : > { %2777 = vst [vmem:[#allocation9_spill] sm:$0xff] %v2685_v15  ;;  %v787_v15 = vadd.f32 %v1945_v55, %v601_v11  ;;  %v907_v42 = vadd.f32 %v2669_v46, %v784_v58  ;;  %v1050_v53 = vadd.f32 %v1981_v29, %v914_v30  ;;  %v1174_v0 = vadd.f32 %v1155_v26, %v1047_v39 }
 0x130   : > { %v1031_v2 = vpop.f32.mrf.mxu0  ;;  %v2687_v31 = vpop.f32.mrf.mxu1 }
 0x131   : > { %2778 = vst [vmem:[#allocation10_spill] sm:$0xff] %v2687_v31  ;;  %v1049_v31 = vadd.f32 %v1980_v36, %v913_v27  ;;  %v910_v13 = vadd.f32 %v2671_v38, %v787_v15  ;;  %v1043_v55 = vadd.f32 %v1012_v23, %v907_v42  ;;  %v1048_v44 = vadd.f32 %v1031_v2, %v912_v21 }
 0x132   : > { %v2008_v34 = vpop.f32.mrf.mxu0  ;;  %v2689_v6 = vpop.f32.mrf.mxu1  ;;  %v1172_v38 = vadd.f32 %v2675_v62, %v1045_v49  ;;  %v1177_v35 = vadd.f32 %v1997_v8, %v1050_v53  ;;  %v1171_v15 = vadd.f32 %v2681_v22, %v1044_v5 }
 0x133   : > { %v1176_v52 = vadd.f32 %v1996_v14, %v1049_v31  ;;  %v1046_v56 = vadd.f32 %v1977_v25, %v910_v13  ;;  %v1170_v20 = vadd.f32 %v2677_v1, %v1043_v55  ;;  %v1175_v25 = vadd.f32 %v1158_v4, %v1048_v44  ;;  %v1800_v4 = vld [vmem:[%s2766_s2] ss:$0 sm:$0xff] }
 0x134   : > { %v1250_v10 = vpop.f32.mrf.mxu0  ;;  %v2028_v45 = vpop.f32.mrf.mxu1  ;;  %v1283_v58 = vadd.f32 %v2008_v34, %v1172_v38  ;;  %v2779_v37 = vld [vmem:[#allocation8_spill] sm:$0xff] }
 0x135   : > { %v1173_v14 = vadd.f32 %v2679_v18, %v1046_v56  ;;  %v1281_v28 = vadd.f32 %v1250_v10, %v1170_v20 }
 0x136   : > { %v2009_v50 = vpop.f32.mrf.mxu0  ;;  %v1390_v43 = vpop.f32.mrf.mxu1  ;;  %v1407_v22 = vadd.f32 %v2779_v37, %v1283_v58  ;;  %v2780_v41 = vld [vmem:[#allocation9_spill] sm:$0xff] }
 0x137   : > { %v1284_v17 = vadd.f32 %v2009_v50, %v1173_v14  ;;  %v1405_v61 = vadd.f32 %v2780_v41, %v1281_v28 }
 0x138   : > { %v1253_v48 = vpop.f32.mrf.mxu0  ;;  %v2029_v40 = vpop.f32.mrf.mxu1  ;;  %v2781_v27 = vld [vmem:[#allocation10_spill] sm:$0xff] }
 0x139   : > { %v1282_v33 = vadd.f32 %v1253_v48, %v1171_v15  ;;  %v1408_v3 = vadd.f32 %v2781_v27, %v1284_v17 }
 0x13a   : > { %v2012_v7 = vpop.f32.mrf.mxu0  ;;  %v1393_v59 = vpop.f32.mrf.mxu1 }
 0x13b   : > { %v1287_v60 = vadd.f32 %v2012_v7, %v1176_v52  ;;  %v1406_v47 = vadd.f32 %v2689_v6, %v1282_v33 }
 0x13c   : > { %v1266_v36 = vpop.f32.mrf.mxu0  ;;  %v2044_v46 = vpop.f32.mrf.mxu1 }
 0x13d   : > { %v1285_v57 = vadd.f32 %v1266_v36, %v1174_v0  ;;  %v1411_v29 = vadd.f32 %v2028_v45, %v1287_v60 }
 0x13e   : > { %v2013_v51 = vpop.f32.mrf.mxu0  ;;  %v1505_v23 = vpop.f32.mrf.mxu1 }
 0x13f   : > { %v1288_v26 = vadd.f32 %v2013_v51, %v1177_v35  ;;  %v1409_v63 = vadd.f32 %v1390_v43, %v1285_v57  ;;  %v1526_v1 = vadd.f32 %v2044_v46, %v1411_v29 }
 0x140   : > { %v1269_v62 = vpop.f32.mrf.mxu0  ;;  %v2045_v8 = vpop.f32.mrf.mxu1 }
 0x141   : > { %v1412_v2 = vadd.f32 %v2029_v40, %v1288_v26  ;;  %v1286_v31 = vadd.f32 %v1269_v62, %v1175_v25  ;;  %v1524_v19 = vadd.f32 %v1505_v23, %v1409_v63  ;;  %v1541_v45 = vadd.f32 %v1800_v4, %v1526_v1 }
 0x142   : > { %v2040_v18 = vpop.f32.mrf.mxu0  ;;  %v1508_v24 = vpop.f32.mrf.mxu1 }
 0x143   : > { %v1410_v11 = vadd.f32 %v1393_v59, %v1286_v31  ;;  %v1527_v34 = vadd.f32 %v2045_v8, %v1412_v2  ;;  %v1522_v10 = vadd.f32 %v2040_v18, %v1407_v22  ;;  %v1539_v50 = vadd.f32 %v1800_v4, %v1524_v19 }
 0x144   : > { %v1489_v32 = vpop.f32.mrf.mxu0 }
 0x145   : > { %v1542_v9 = vadd.f32 %v1800_v4, %v1527_v34  ;;  %v1525_v12 = vadd.f32 %v1508_v24, %v1410_v11  ;;  %v1520_v16 = vadd.f32 %v1489_v32, %v1405_v61  ;;  %v1537_v48 = vadd.f32 %v1800_v4, %v1522_v10 }
 0x146   : > { %v2041_v43 = vpop.f32.mrf.mxu0 }
 0x147   : > { %v1523_v30 = vadd.f32 %v2041_v43, %v1408_v3  ;;  %v1825_v39 = vpack.c.bf16 %v1542_v9, %v1541_v45  ;;  %v1540_v42 = vadd.f32 %v1800_v4, %v1525_v12  ;;  %v1535_v52 = vadd.f32 %v1800_v4, %v1520_v16 }
 0x148   : > { %v1492_v13 = vpop.f32.mrf.mxu0 }
 0x149   : > { %v1538_v40 = vadd.f32 %v1800_v4, %v1523_v30  ;;  %1829 = vst [vmem:[%s219_s27 + $0x18] sm:$0xff] %v1825_v39   ;;  %v1521_v21 = vadd.f32 %v1492_v13, %v1406_v47  ;;  %v1820_v49 = vpack.c.bf16 %v1540_v42, %v1539_v50 }
 0x14b   : > { %v1815_v53 = vpack.c.bf16 %v1538_v40, %v1537_v48  ;;  %v1536_v6 = vadd.f32 %v1800_v4, %v1521_v21  ;;  %1828 = vst [vmem:[%s219_s27 + $0x10] sm:$0xff] %v1820_v49  }
 0x14d   : > { %1827 = vst [vmem:[%s219_s27 + $0x8] sm:$0xff] %v1815_v53   ;;  %v1810_v54 = vpack.c.bf16 %v1536_v6, %v1535_v52 }
 0x14f   : > { %1811 = vst [vmem:[%s219_s27] sm:$0xff] %v1810_v54  }
 0x150   : > { %2209 = shalt.err (!%p2206_p3)
}
 0x151   : > { %s2210_s10 = scalar_lea.hbm %s2715_s5, 512  ;;  %s2214_s19 = scalar_lea.hbm %s2767_s3, 1024 }
 0x152   : > { %p2211_p5 = scmp.ne.s32.totalorder %s2715_s5, %s2210_s10  ;;  %p2215_p9 = scmp.lt.s32.totalorder %s2715_s5, %s2767_s3 }
 0x153   : > { %p2216_p12 = scmp.lt.s32.totalorder %s2214_s19, %s2210_s10 }
 0x154   : > { %p2212_p6 = pnand %p2211_p5, %p2344_p4 }
 0x155   : > { %p2217_p10 = por %p2216_p12, %p2215_p9 }
 0x156   : > { %p2213_p7 = pneg %p2212_p6 }
 0x158   : > { %p2218_p11 = pnand %p2217_p10, %p2213_p7 }
 0x15a   : > { %2221 = shalt.err (!%p2218_p11)
}
 0x15b   : > { %s2282_s26 = smov 64   ;;  %s2283_s27 = smov 4  }
 0x15c   : > { %2059 = dma.vmem_to_hbm [thread:$0]  (%p2344_p4), %s2710_s28, 512, %s2715_s5, %s2719_s6, %s2282_s26, %s2282_s26, %s2283_s27  }
 0x15d PF: > { %p2071_p13 = scmp.ge.s32.totalorder %s2276_s17, 2  ;;  %s1591_s29 = sand.u32 1, %s2256_s12  }
 0x15e   : > { %s1592_s30 = scalar_lea.sflag [#allocation4], %s1591_s29 }
 0x15f   : > { %p2066_p0 = pnand %p2071_p13, %p2351_p8 }
 0x161   : > { %p2067_p1 = pneg %p2066_p0 }
 0x163   : > { %2251 = dma.done.wait (%p2067_p1), %s1592_s30, 512  }
 0x164   : > { %2253 = vsyncadd (%p2067_p1), %s1592_s30, 4294966784  ;;  %s17_s17 = sadd.s32 1, %s2276_s17   ;;  %s2782_s12 = smov %s2260_s13 }
 0x165   : > { %p14_p2 = scmp.ge.s32.totalorder %s17_s17, 4   ;;  %s2783_s13 = smov %s2264_s14 }
 0x166   : > { %s2784_s14 = smov %s2357_s25  ;;  %s2785_s15 = smov %s2272_s16 }
 0x167   : > { %s2786_s16 = smov %s2788_s20  ;;  %16 = sbr.rel (!%p14_p2) target bundleno = 5 (0x5), region = 77 }
 0x16c   :  { %1597 = vsyncpa [#allocation3], 1 }
 0x16d   :  { %1599 = vsyncpa [#allocation3 + $0x1], 1 }
 0x16e   :  { %1600 = vsyncpa [#allocation4], 1 }
 0x16f   :  { %1602 = vsyncpa [#allocation4 + $0x1], 1 }

</bundles_post_ra>
